<compile_context>
chip_gen: v5e
topology: v5e:2x2
jax: 0.10.0
libtpu: 0.0.40
codegen_flags: <defaults>
</compile_context>

<pallas_src>
import functools

import jax
import jax.numpy as jnp
from jax.experimental import pallas as pl
from jax.experimental.pallas import tpu as pltpu

IN_FEATURES = 58
IN_PADDED = 64          # 58 zero-padded up to a clean multiple of 8 sublanes
H1 = 64
H2 = 32


def mlp_kernel(x_ref, w1_ref, b1_ref, w2_ref, b2_ref, w3_ref, b3_ref, o_ref,
               *, compute_dtype):
    # x tile: (TB, 64). Cast once for the MXU; accumulate in f32.
    x = x_ref[...].astype(compute_dtype)

    h1 = jnp.dot(x, w1_ref[...], preferred_element_type=jnp.float32)
    h1 = jnp.maximum(h1 + b1_ref[...], 0.0)                      # f32 bias+ReLU

    h2 = jnp.dot(h1.astype(compute_dtype), w2_ref[...],
                 preferred_element_type=jnp.float32)
    h2 = jnp.maximum(h2 + b2_ref[...], 0.0)

    # Final layer has N=1: a matmul would use 1 MXU column and still pay the
    # full push/pop latency.  Do it on the VPU/XLU instead: elementwise
    # multiply by the (1, 32) weight row and reduce over the lane axis.
    out = jnp.sum(h2 * w3_ref[...], axis=-1, keepdims=True) + b3_ref[...]
    o_ref[...] = out.astype(o_ref.dtype)


def mlp_forward(x, params, *, compute_dtype=jnp.float32, tile_batch=4096):
    """x: (batch, 58) f32. params: (w1(58,64), b1(1,64), w2(64,32), b2(1,32),
    w3(32,1), b3(1,1)).  Returns (batch, 1) f32."""
    w1, b1, w2, b2, w3, b3 = params
    batch = x.shape[0]

    # ---- batch tiling: TB rows per grid step, pad batch to a multiple of TB.
    tb = tile_batch
    if batch < tb:
        tb = max(8, ((batch + 7) // 8) * 8)          # small-batch fallback
    grid_b = pl.cdiv(batch, tb)
    batch_padded = grid_b * tb

    # ---- feature padding 58 -> 64 (zeros contribute nothing to the matmul).
    x_p = jnp.pad(x, ((0, batch_padded - batch), (0, IN_PADDED - IN_FEATURES)))
    w1_p = jnp.pad(w1, ((0, IN_PADDED - IN_FEATURES), (0, 0)))

    # ---- cast weights once in the wrapper (bf16 on v6e/v7x if requested).
    w1_c = w1_p.astype(compute_dtype)
    w2_c = w2.astype(compute_dtype)
    w3_row = jnp.reshape(w3, (1, H2)).astype(jnp.float32)   # (1, 32) for VPU path
    b1_f = b1.astype(jnp.float32)
    b2_f = b2.astype(jnp.float32)
    b3_f = jnp.reshape(b3, (1, 1)).astype(jnp.float32)

    const = lambda i: (0, 0)                      # weights/biases stay resident
    out = pl.pallas_call(
        functools.partial(mlp_kernel, compute_dtype=compute_dtype),
        out_shape=jax.ShapeDtypeStruct((batch_padded, 1), jnp.float32),
        grid=(grid_b,),
        in_specs=[
            pl.BlockSpec((tb, IN_PADDED), lambda i: (i, 0)),   # x tile (pipelined)
            pl.BlockSpec((IN_PADDED, H1), const),              # w1
            pl.BlockSpec((1, H1), const),                      # b1
            pl.BlockSpec((H1, H2), const),                     # w2
            pl.BlockSpec((1, H2), const),                      # b2
            pl.BlockSpec((1, H2), const),                      # w3 as a row
            pl.BlockSpec((1, 1), const),                       # b3
        ],
        out_specs=pl.BlockSpec((tb, 1), lambda i: (i, 0)),
        compiler_params=pltpu.CompilerParams(
            dimension_semantics=("parallel",),                 # v7x: 2 TCs
        ),
    )(x_p, w1_c, b1_f, w2_c, b2_f, w3_row, b3_f)

    return out[:batch]


def init_params(key):
    """Deterministic init mimicking PyTorch Linear default
    (U[-1/sqrt(fan_in), 1/sqrt(fan_in)]); weights stored as (in, out)."""
    dims = [(IN_FEATURES, H1), (H1, H2), (H2, 1)]
    params = []
    for (fan_in, fan_out) in dims:
        key, kw, kb = jax.random.split(key, 3)
        bound = 1.0 / jnp.sqrt(float(fan_in))
        w = jax.random.uniform(kw, (fan_in, fan_out), jnp.float32, -bound, bound)
        b = jax.random.uniform(kb, (1, fan_out), jnp.float32, -bound, bound)
        params += [w, b]
    return tuple(params)


if __name__ == "__main__":
    key = jax.random.PRNGKey(0)
    key, kx = jax.random.split(key)
    batch = 8
    x = jax.random.normal(kx, (batch, IN_FEATURES), jnp.float32)

    params = init_params(key)

    # f32 compute keeps the tight tolerance; pass compute_dtype=jnp.bfloat16
    # on v6e/v7x for higher MXU throughput at large batch.
    out = mlp_forward(x, params, compute_dtype=jnp.float32)
    out = jax.block_until_ready(out)

    # Reference check in plain JAX (same math, no Pallas).
    w1, b1, w2, b2, w3, b3 = params
    ref = jnp.maximum(x @ w1 + b1, 0.0)
    ref = jnp.maximum(ref @ w2 + b2, 0.0)
    ref = ref @ w3 + b3
    assert out.shape == (batch, 1)
    assert jnp.allclose(out, ref, atol=1e-5, rtol=1e-5)

    print("KERNEL_OK")
</pallas_src>

<mosaic_0001>
module attributes {stable_mosaic.version = 11 : i64} {
  func.func @mlp_kernel(%arg0: i32, %arg1: memref<8x64xf32, #tpu.memory_space<vmem>>, %arg2: memref<64x64xf32, #tpu.memory_space<vmem>>, %arg3: memref<1x64xf32, #tpu.memory_space<vmem>>, %arg4: memref<64x32xf32, #tpu.memory_space<vmem>>, %arg5: memref<1x32xf32, #tpu.memory_space<vmem>>, %arg6: memref<1x32xf32, #tpu.memory_space<vmem>>, %arg7: memref<1x1xf32, #tpu.memory_space<vmem>>, %arg8: memref<8x1xf32, #tpu.memory_space<vmem>>) attributes {dimension_semantics = [#tpu.dimension_semantics<parallel>], iteration_bounds = array<i64: 1>, scalar_prefetch = 0 : i64, scratch_operands = 0 : i64, tpu.core_type = #tpu.core_type<tc>, window_params = [{transform_indices = @transform_0, window_bounds = array<i64: 8, 64>}, {pipeline_mode = #tpu.pipeline_mode<synchronous>, transform_indices = @transform_1, window_bounds = array<i64: 64, 64>}, {pipeline_mode = #tpu.pipeline_mode<synchronous>, transform_indices = @transform_2, window_bounds = array<i64: 1, 64>}, {pipeline_mode = #tpu.pipeline_mode<synchronous>, transform_indices = @transform_3, window_bounds = array<i64: 64, 32>}, {pipeline_mode = #tpu.pipeline_mode<synchronous>, transform_indices = @transform_4, window_bounds = array<i64: 1, 32>}, {pipeline_mode = #tpu.pipeline_mode<synchronous>, transform_indices = @transform_5, window_bounds = array<i64: 1, 32>}, {pipeline_mode = #tpu.pipeline_mode<synchronous>, transform_indices = @transform_6, window_bounds = array<i64: 1, 1>}, {transform_indices = @transform_7, window_bounds = array<i64: 8, 1>}]} {
    %c0 = arith.constant 0 : index
    %c0_0 = arith.constant 0 : index
    %0 = vector.load %arg1[%c0, %c0_0] : memref<8x64xf32, #tpu.memory_space<vmem>>, vector<8x64xf32>
    %c0_1 = arith.constant 0 : index
    %c0_2 = arith.constant 0 : index
    %1 = vector.load %arg2[%c0_1, %c0_2] : memref<64x64xf32, #tpu.memory_space<vmem>>, vector<64x64xf32>
    %cst = arith.constant dense<0.000000e+00> : vector<8x64xf32>
    %2 = tpu.matmul %0, %1, %cst {dimension_numbers = #tpu.dot_dimension_numbers<[1], [0], [0], [1], [0, 0, 1, 1], [], []>} : vector<8x64xf32>, vector<64x64xf32>, vector<8x64xf32> -> vector<8x64xf32>
    %c0_3 = arith.constant 0 : index
    %c0_4 = arith.constant 0 : index
    %3 = vector.load %arg3[%c0_3, %c0_4] : memref<1x64xf32, #tpu.memory_space<vmem>>, vector<1x64xf32>
    %4 = vector.broadcast %3 : vector<1x64xf32> to vector<8x64xf32>
    %5 = arith.addf %2, %4 : vector<8x64xf32>
    %cst_5 = arith.constant 0.000000e+00 : f32
    %6 = vector.broadcast %cst_5 : f32 to vector<8x64xf32>
    %7 = arith.maximumf %5, %6 : vector<8x64xf32>
    %c0_6 = arith.constant 0 : index
    %c0_7 = arith.constant 0 : index
    %8 = vector.load %arg4[%c0_6, %c0_7] : memref<64x32xf32, #tpu.memory_space<vmem>>, vector<64x32xf32>
    %cst_8 = arith.constant dense<0.000000e+00> : vector<8x32xf32>
    %9 = tpu.matmul %7, %8, %cst_8 {dimension_numbers = #tpu.dot_dimension_numbers<[1], [0], [0], [1], [0, 0, 1, 1], [], []>} : vector<8x64xf32>, vector<64x32xf32>, vector<8x32xf32> -> vector<8x32xf32>
    %c0_9 = arith.constant 0 : index
    %c0_10 = arith.constant 0 : index
    %10 = vector.load %arg5[%c0_9, %c0_10] : memref<1x32xf32, #tpu.memory_space<vmem>>, vector<1x32xf32>
    %11 = vector.broadcast %10 : vector<1x32xf32> to vector<8x32xf32>
    %12 = arith.addf %9, %11 : vector<8x32xf32>
    %cst_11 = arith.constant 0.000000e+00 : f32
    %13 = vector.broadcast %cst_11 : f32 to vector<8x32xf32>
    %14 = arith.maximumf %12, %13 : vector<8x32xf32>
    %c0_12 = arith.constant 0 : index
    %c0_13 = arith.constant 0 : index
    %15 = vector.load %arg6[%c0_12, %c0_13] : memref<1x32xf32, #tpu.memory_space<vmem>>, vector<1x32xf32>
    %16 = vector.broadcast %15 : vector<1x32xf32> to vector<8x32xf32>
    %17 = arith.mulf %14, %16 : vector<8x32xf32>
    %cst_14 = arith.constant dense<0.000000e+00> : vector<8xf32>
    %18 = vector.multi_reduction <add>, %17, %cst_14 [1] : vector<8x32xf32> to vector<8xf32>
    %19 = vector.shape_cast %18 : vector<8xf32> to vector<8x1xf32>
    %c0_15 = arith.constant 0 : index
    %c0_16 = arith.constant 0 : index
    %20 = vector.load %arg7[%c0_15, %c0_16] : memref<1x1xf32, #tpu.memory_space<vmem>>, vector<1x1xf32>
    %21 = vector.broadcast %20 : vector<1x1xf32> to vector<8x1xf32>
    %22 = arith.addf %19, %21 : vector<8x1xf32>
    %c0_17 = arith.constant 0 : index
    %c0_18 = arith.constant 0 : index
    %23 = vector.load %arg8[%c0_17, %c0_18] : memref<8x1xf32, #tpu.memory_space<vmem>>, vector<8x1xf32>
    tpu.vector_store %arg8[%c0_17, %c0_18], %22 {strides = array<i32>} : memref<8x1xf32, #tpu.memory_space<vmem>>, vector<8x1xf32>,
    return
  }
  func.func @transform_0(%arg0: i32) -> (i32, i32) {
    %c0_i32 = arith.constant 0 : i32
    %c0_i32_0 = arith.constant 0 : i32
    return %arg0, %c0_i32 : i32, i32
  }
  func.func @transform_1(%arg0: i32) -> (i32, i32) {
    %c0_i32 = arith.constant 0 : i32
    %c0_i32_0 = arith.constant 0 : i32
    %c0_i32_1 = arith.constant 0 : i32
    return %c0_i32, %c0_i32_0 : i32, i32
  }
  func.func @transform_2(%arg0: i32) -> (i32, i32) {
    %c0_i32 = arith.constant 0 : i32
    %c0_i32_0 = arith.constant 0 : i32
    %c0_i32_1 = arith.constant 0 : i32
    return %c0_i32, %c0_i32_0 : i32, i32
  }
  func.func @transform_3(%arg0: i32) -> (i32, i32) {
    %c0_i32 = arith.constant 0 : i32
    %c0_i32_0 = arith.constant 0 : i32
    %c0_i32_1 = arith.constant 0 : i32
    return %c0_i32, %c0_i32_0 : i32, i32
  }
  func.func @transform_4(%arg0: i32) -> (i32, i32) {
    %c0_i32 = arith.constant 0 : i32
    %c0_i32_0 = arith.constant 0 : i32
    %c0_i32_1 = arith.constant 0 : i32
    return %c0_i32, %c0_i32_0 : i32, i32
  }
  func.func @transform_5(%arg0: i32) -> (i32, i32) {
    %c0_i32 = arith.constant 0 : i32
    %c0_i32_0 = arith.constant 0 : i32
    %c0_i32_1 = arith.constant 0 : i32
    return %c0_i32, %c0_i32_0 : i32, i32
  }
  func.func @transform_6(%arg0: i32) -> (i32, i32) {
    %c0_i32 = arith.constant 0 : i32
    %c0_i32_0 = arith.constant 0 : i32
    %c0_i32_1 = arith.constant 0 : i32
    return %c0_i32, %c0_i32_0 : i32, i32
  }
  func.func @transform_7(%arg0: i32) -> (i32, i32) {
    %c0_i32 = arith.constant 0 : i32
    %c0_i32_0 = arith.constant 0 : i32
    return %arg0, %c0_i32 : i32, i32
  }
}

</mosaic_0001>

<bundles_post_ra>
// kernel: tpu_custom_call.1
= control target key start
LH: loop header
LB: loop body
LE: loop exit
PB: predicated region body
PF: predicated region fallthrough
CT: control target
= control target key end

     0   :  { %vm41_vm0 = vcmask 523264   ;;  %vm107_vm1 = vcmask 261120   ;;  %vm116_vm2 = vcmask 7168   ;;  %s234_s1 = inlined_call_operand.vmem [shape: f32[64,64], index: 1, kind: input, shape index: {}]   ;;  %s235_s3 = inlined_call_operand.vmem [shape: f32[64,32], index: 3, kind: input, shape index: {}]   ;;  %s236_s2 = inlined_call_operand.vmem [shape: f32[1,64], index: 2, kind: input, shape index: {}]   ;;  %s237_s0 = inlined_call_operand.vmem [shape: f32[8,64], index: 0, kind: input, shape index: {}]   ;;  %s238_s4 = inlined_call_operand.vmem [shape: f32[1,32], index: 4, kind: input, shape index: {}]   ;;  %s239_s5 = inlined_call_operand.vmem [shape: f32[1,32], index: 5, kind: input, shape index: {}]   ;;  %s240_s6 = inlined_call_operand.<no memory space> [shape: f32[1,1], index: 6, kind: input, shape index: {}]   ;;  %s241_s7 = inlined_call_operand.vmem [shape: f32[8,1], index: 7, kind: output, shape index: {}]  }
   0x1   :  { %v36_v0 = vld [vmem:[%s234_s1 + $0x38] sm:$0xff]  ;;  %v35_v1 = vld [vmem:[%s234_s1 + $0x30] sm:$0xff]  ;;  %v34_v2 = vld [vmem:[%s234_s1 + $0x28] sm:$0xff]  ;;  %v12_v21 = vstv %s240_s6 }
   0x2   :  { %53 = vmatpush.msra.mxu0 %v36_v0  ;;  %v73_v3 = vld [vmem:[%s235_s3 + $0x38] sm:$0xff]  ;;  %v72_v4 = vld [vmem:[%s235_s3 + $0x30] sm:$0xff]  ;;  %v33_v5 = vld [vmem:[%s234_s1 + $0x20] sm:$0xff]  ;;  %13 = vst [vmem:[#allocation2] sm:$0x1] %v12_v21 }
   0x3   :  { %89 = vmatpush.msra.mxu1 %v73_v3  ;;  %v71_v6 = vld [vmem:[%s235_s3 + $0x28] sm:$0xff]  ;;  %v32_v7 = vld [vmem:[%s234_s1 + $0x18] sm:$0xff]  ;;  %v70_v8 = vld [vmem:[%s235_s3 + $0x20] sm:$0xff] }
   0x4   :  { %54 = vmatpush.msra.mxu0 %v35_v1  ;;  %v31_v9 = vld [vmem:[%s234_s1 + $0x10] sm:$0xff]  ;;  %v69_v10 = vld [vmem:[%s235_s3 + $0x18] sm:$0xff]  ;;  %v30_v11 = vld [vmem:[%s234_s1 + $0x8] sm:$0xff] }
   0x5   :  { %90 = vmatpush.msra.mxu1 %v72_v4  ;;  %v29_v12 = vld [vmem:[%s234_s1] sm:$0xff]  ;;  %v68_v14 = vld [vmem:[%s235_s3 + $0x10] sm:$0xff]  ;;  %v67_v15 = vld [vmem:[%s235_s3 + $0x8] sm:$0xff] }
   0x6   :  { %55 = vmatpush.msra.mxu0 %v34_v2  ;;  %v28_v13 = vld [vmem:[%s237_s0] sm:$0xff] }
   0x7   :  { %91 = vmatpush.msra.mxu1 %v71_v6  ;;  %v66_v16 = vld [vmem:[%s235_s3] sm:$0xff] }
   0x8   :  { %56 = vmatpush.msra.mxu0 %v33_v5  ;;  %v124_v17 = vld [vmem:[%s236_s2] ss:$0 sm:$0xff] }
   0x9   :  { %92 = vmatpush.msra.mxu1 %v70_v8  ;;  %v125_v22 = vld [vmem:[%s238_s4] ss:$0 sm:$0xff] }
   0xa   :  { %57 = vmatpush.msra.mxu0 %v32_v7  ;;  %v126_v25 = vld [vmem:[%s239_s5] ss:$0 sm:$0xff] }
   0xb   :  { %93 = vmatpush.msra.mxu1 %v69_v10  ;;  %v127_v29 = vld [vmem:[#allocation2] ss:$0 sm:$0xff] }
   0xc   :  { %58 = vmatpush.msra.mxu0 %v31_v9 }
   0xd   :  { %94 = vmatpush.msra.mxu1 %v68_v14 }
   0xe   :  { %59 = vmatpush.msra.mxu0 %v30_v11 }
   0xf   :  { %95 = vmatpush.msra.mxu1 %v67_v15 }
  0x10   :  { %60 = vmatpush.msra.mxu0 %v29_v12 }
  0x11   :  { %122 = vmatmul.msk.f32.vlgmr.msra.gmra.mxu0 %vm41_vm0, %v28_v13  ;;  %96 = vmatpush.msra.mxu1 %v66_v16 }
  0x8e   :  { %v62_v18 = vpop.f32.mrf.mxu0 }
  0x8f   :  { %v63_v19 = vadd.f32 %v124_v17, %v62_v18 }
  0x91   :  { %v65_v20 = vmax.f32 %v63_v19, 0.0 }
  0x93   :  { %123 = vmatmul.msk.f32.vlgmr.msra.gmra.mxu1 %vm41_vm0, %v65_v20 }
 0x110   :  { %v98_v23 = vpop.f32.mrf.mxu1 }
 0x111   :  { %v99_v24 = vadd.f32 %v125_v22, %v98_v23 }
 0x113   :  { %v101_v26 = vmax.f32 %v99_v24, 0.0 }
 0x115   :  { %v106_v27 = vmul.f32 %v126_v25, %v101_v26 }
 0x117   :  { %v108_v28 = vsel %vm107_vm1, %v106_v27, 0.0 }
 0x118   :  { %109 = vadd.xlane.f32.xlu0 %v108_v28 }
 0x18b   :  { %v110_v30 = vpop.xlane.xlu0 %109 }
 0x18c   :  { %v115_v31 = vadd.f32 %v127_v29, %v110_v30 }
 0x18e   :  { %117 = vst.msk [vmem:[%s241_s7] sm:$0xff] %vm116_vm2, %v115_v31 }

</bundles_post_ra>
